<compile_context>
chip_gen: v7x
topology: tpu7x:2x2x1
jax: 0.10.0
libtpu: 0.0.40
codegen_flags: <defaults>
</compile_context>

<pallas_src>
import functools
import math

import numpy as np

import jax
import jax.numpy as jnp
from jax.experimental import pallas as pl
from jax.experimental.pallas import tpu as pltpu


def _conv_block_kernel(x_ref, w_ref, m_ref, b_ref, o_ref, *, K, H, W,
                       pad_top, pad_left, activation):
    """Processes one batch element.

    x_ref: (1, Cin, H*W)      input, channels on sublanes, flat spatial on lanes
    w_ref: (K*K*Cout, Cin)    weights, rows ordered (kh, kw, co)
    m_ref: (K*K, 1, H*W)      per-tap 0/1 boundary masks (implicit zero padding)
    b_ref: (Cout, 1)          bias
    o_ref: (1, Cout, H*W)     lane-dense output
    """
    Cout = o_ref.shape[1]
    P = H * W

    # Single MXU matmul for all K*K taps at once (one push/drain instead of 16):
    #   y[(kh*K + kw)*Cout + co, h*W + w] = sum_ci weight[co, ci, kh, kw] * x[ci, h, w]
    y = jnp.dot(w_ref[...], x_ref[0], preferred_element_type=jnp.float32)

    acc = jnp.zeros((Cout, P), dtype=jnp.float32)
    for kh in range(K):
        dh = kh - pad_top
        for kw in range(K):
            dw = kw - pad_left
            t = kh * K + kw
            # Cout(=8)-row slice at a sublane-aligned offset: no relayout.
            tap = y[t * Cout:(t + 1) * Cout, :]
            # The conv tap needs y at flat position p + dh*W + dw.  On the
            # flattened spatial axis that is a pure lane rotation (XLU slot),
            # not a strided slice/reshape.
            shift = dh * W + dw
            if shift != 0:
                # pltpu.roll == jnp.roll: out[i] = in[(i - s) % P].  With
                # s = (-shift) % P this gives out[p] = in[p + shift]; any
                # wrapped position is zeroed by the boundary mask below.
                tap = pltpu.roll(tap, (-shift) % P, axis=1)
            # Boundary mask (1.0 where source pixel (h+dh, w+dw) is inside the
            # image, 0.0 in the implicit zero padding).  (Cout,P) * (1,P).
            acc = acc + tap * m_ref[t]

    acc = acc + b_ref[...]                      # (Cout, 1) lane-broadcast bias
    if activation == "relu":
        acc = jnp.maximum(acc, 0.0)
    elif activation == "leaky":
        acc = jnp.where(acc >= 0.0, acc, 0.2 * acc)
    elif activation == "tanh":
        acc = jnp.tanh(acc)
    # activation == "none": identity
    # TODO(synk): norm layers (BatchNorm2d / InstanceNorm2d) are not implemented;
    # this covers the ConvBlock default norm=None.
    o_ref[0, ...] = acc.astype(o_ref.dtype)


def conv_block_forward(x, weight, bias, *, ksize=4, stride=1, dil=1,
                       activation="relu"):
    """ConvBlock forward (norm=None).

    x:      (N, Cin, H, W)    float32, NCHW (kept native, never transposed)
    weight: (Cout, Cin, K, K) float32 (PyTorch Conv2d layout)
    bias:   (Cout,)           float32
    """
    assert stride == 1 and dil == 1, "this instantiation covers the default ConvBlock"
    N, Cin, H, W = x.shape
    Cout = weight.shape[0]
    K = ksize
    P = H * W

    # PyTorch/retiming-style asymmetric 'same' padding:
    #   pad = .5 * (s * (dim // s - 1) + (k - 1) * (d - 1) + k - dim), (floor, ceil)
    # Only the low-side pad is needed explicitly; the halo itself is handled by
    # boundary masks inside the kernel instead of materialized zero padding.
    pady = 0.5 * (stride * (H // stride - 1) + (K - 1) * (dil - 1) + K - H)
    padx = 0.5 * (stride * (W // stride - 1) + (K - 1) * (dil - 1) + K - W)
    pad_top, pad_left = math.floor(pady), math.floor(padx)

    # Free, contiguous reshapes only (no transpose, no jnp.pad).
    x_flat = x.reshape(N, Cin, P)

    # Weights: (Cout, Cin, Kh, Kw) -> (Kh, Kw, Cout, Cin) -> (K*K*Cout, Cin).
    # The kernel then only slices whole Cout-row groups (sublane aligned) and
    # never slices along the contraction dim.
    w_all = jnp.transpose(weight, (2, 3, 0, 1)).reshape(K * K * Cout, Cin)
    b_col = bias.reshape(Cout, 1)

    # Per-tap boundary masks, computed host-side from static shapes only.
    hh = np.arange(H).reshape(H, 1)
    ww = np.arange(W).reshape(1, W)
    masks_np = np.empty((K * K, 1, P), dtype=np.float32)
    for kh in range(K):
        for kw in range(K):
            dh, dw = kh - pad_top, kw - pad_left
            ok = ((hh + dh >= 0) & (hh + dh < H) &
                  (ww + dw >= 0) & (ww + dw < W))
            masks_np[kh * K + kw, 0, :] = ok.reshape(-1).astype(np.float32)
    masks = jnp.asarray(masks_np)

    kernel = functools.partial(
        _conv_block_kernel, K=K, H=H, W=W,
        pad_top=pad_top, pad_left=pad_left, activation=activation)

    out_flat = pl.pallas_call(
        kernel,
        out_shape=jax.ShapeDtypeStruct((N, Cout, P), x.dtype),
        grid_spec=pltpu.PrefetchScalarGridSpec(
            num_scalar_prefetch=0,
            grid=(N,),
            in_specs=[
                pl.BlockSpec((1, Cin, P), lambda n: (n, 0, 0)),
                pl.BlockSpec((K * K * Cout, Cin), lambda n: (0, 0)),
                pl.BlockSpec((K * K, 1, P), lambda n: (0, 0, 0)),
                pl.BlockSpec((Cout, 1), lambda n: (0, 0)),
            ],
            out_specs=pl.BlockSpec((1, Cout, P), lambda n: (n, 0, 0)),
        ),
        compiler_params=pltpu.CompilerParams(
            dimension_semantics=("parallel",),      # megacore sharding over batch
            vmem_limit_bytes=32 * 1024 * 1024,
        ),
    )(x_flat, w_all, masks, b_col)

    return out_flat.reshape(N, Cout, H, W)


if __name__ == "__main__":
    # Small, ConvBlock-consistent shapes: batch=2, in_channels=4, out_channels=8, 16x16.
    N, Cin, Cout, H, W = 2, 4, 8, 16, 16
    K = 4

    key = jax.random.PRNGKey(0)
    kx, kw_, kb = jax.random.split(key, 3)
    x = jax.random.normal(kx, (N, Cin, H, W), dtype=jnp.float32)
    weight = 0.1 * jax.random.normal(kw_, (Cout, Cin, K, K), dtype=jnp.float32)
    bias = 0.1 * jax.random.normal(kb, (Cout,), dtype=jnp.float32)

    out = conv_block_forward(x, weight, bias, ksize=K, stride=1, dil=1)
    out = jax.block_until_ready(out)

    # Reference: XLA conv with the same asymmetric 'same' padding + bias + ReLU.
    ref = jax.lax.conv_general_dilated(
        x, weight, window_strides=(1, 1), padding=((1, 2), (1, 2)),
        dimension_numbers=("NCHW", "OIHW", "NCHW"),
    ) + bias.reshape(1, Cout, 1, 1)
    ref = jnp.maximum(ref, 0.0)

    assert out.shape == (N, Cout, H, W)
    assert jnp.allclose(out, ref, atol=1e-4, rtol=1e-4)

    print("KERNEL_OK")
</pallas_src>

<mosaic_0001>
module attributes {stable_mosaic.version = 11 : i64} {
  func.func @_conv_block_kernel(%arg0: i32, %arg1: memref<1x4x256xf32, #tpu.memory_space<vmem>>, %arg2: memref<128x4xf32, #tpu.memory_space<vmem>>, %arg3: memref<16x1x256xf32, #tpu.memory_space<vmem>>, %arg4: memref<8x1xf32, #tpu.memory_space<vmem>>, %arg5: memref<1x8x256xf32, #tpu.memory_space<vmem>>) attributes {dimension_semantics = [#tpu.dimension_semantics<parallel>], iteration_bounds = array<i64: 2>, scalar_prefetch = 0 : i64, scratch_operands = 0 : i64, tpu.core_type = #tpu.core_type<tc>, window_params = [{transform_indices = @transform_0, window_bounds = array<i64: 1, 4, 256>}, {pipeline_mode = #tpu.pipeline_mode<synchronous>, transform_indices = @transform_1, window_bounds = array<i64: 128, 4>}, {pipeline_mode = #tpu.pipeline_mode<synchronous>, transform_indices = @transform_2, window_bounds = array<i64: 16, 1, 256>}, {pipeline_mode = #tpu.pipeline_mode<synchronous>, transform_indices = @transform_3, window_bounds = array<i64: 8, 1>}, {transform_indices = @transform_4, window_bounds = array<i64: 1, 8, 256>}]} {
    %c0 = arith.constant 0 : index
    %c0_0 = arith.constant 0 : index
    %0 = vector.load %arg2[%c0, %c0_0] : memref<128x4xf32, #tpu.memory_space<vmem>>, vector<128x4xf32>
    %c0_1 = arith.constant 0 : index
    %c0_2 = arith.constant 0 : index
    %c0_3 = arith.constant 0 : index
    %1 = vector.load %arg1[%c0_1, %c0_2, %c0_3] : memref<1x4x256xf32, #tpu.memory_space<vmem>>, vector<1x4x256xf32>
    %2 = vector.shape_cast %1 : vector<1x4x256xf32> to vector<4x256xf32>
    %cst = arith.constant dense<0.000000e+00> : vector<128x256xf32>
    %3 = tpu.matmul %0, %2, %cst {dimension_numbers = #tpu.dot_dimension_numbers<[1], [0], [0], [1], [0, 0, 1, 1], [], []>} : vector<128x4xf32>, vector<4x256xf32>, vector<128x256xf32> -> vector<128x256xf32>
    %cst_4 = arith.constant 0.000000e+00 : f32
    %4 = vector.broadcast %cst_4 : f32 to vector<8x256xf32>
    %5 = vector.extract_strided_slice %3 {offsets = [0, 0], sizes = [8, 256], strides = [1, 1]} : vector<128x256xf32> to vector<8x256xf32>
    %c17_i32 = arith.constant 17 : i32
    %6 = tpu.dynamic_rotate %5 by %c17_i32 dim 1 : vector<8x256xf32>, i32 -> vector<8x256xf32>
    %c0_5 = arith.constant 0 : index
    %c0_6 = arith.constant 0 : index
    %c0_7 = arith.constant 0 : index
    %7 = vector.load %arg3[%c0_5, %c0_6, %c0_7] : memref<16x1x256xf32, #tpu.memory_space<vmem>>, vector<1x1x256xf32>
    %8 = vector.shape_cast %7 : vector<1x1x256xf32> to vector<1x256xf32>
    %9 = vector.broadcast %8 : vector<1x256xf32> to vector<8x256xf32>
    %10 = arith.mulf %6, %9 : vector<8x256xf32>
    %11 = arith.addf %4, %10 : vector<8x256xf32>
    %12 = vector.extract_strided_slice %3 {offsets = [8, 0], sizes = [8, 256], strides = [1, 1]} : vector<128x256xf32> to vector<8x256xf32>
    %c16_i32 = arith.constant 16 : i32
    %13 = tpu.dynamic_rotate %12 by %c16_i32 dim 1 : vector<8x256xf32>, i32 -> vector<8x256xf32>
    %c1 = arith.constant 1 : index
    %c0_8 = arith.constant 0 : index
    %c0_9 = arith.constant 0 : index
    %14 = vector.load %arg3[%c1, %c0_8, %c0_9] : memref<16x1x256xf32, #tpu.memory_space<vmem>>, vector<1x1x256xf32>
    %15 = vector.shape_cast %14 : vector<1x1x256xf32> to vector<1x256xf32>
    %16 = vector.broadcast %15 : vector<1x256xf32> to vector<8x256xf32>
    %17 = arith.mulf %13, %16 : vector<8x256xf32>
    %18 = arith.addf %11, %17 : vector<8x256xf32>
    %19 = vector.extract_strided_slice %3 {offsets = [16, 0], sizes = [8, 256], strides = [1, 1]} : vector<128x256xf32> to vector<8x256xf32>
    %c15_i32 = arith.constant 15 : i32
    %20 = tpu.dynamic_rotate %19 by %c15_i32 dim 1 : vector<8x256xf32>, i32 -> vector<8x256xf32>
    %c2 = arith.constant 2 : index
    %c0_10 = arith.constant 0 : index
    %c0_11 = arith.constant 0 : index
    %21 = vector.load %arg3[%c2, %c0_10, %c0_11] : memref<16x1x256xf32, #tpu.memory_space<vmem>>, vector<1x1x256xf32>
    %22 = vector.shape_cast %21 : vector<1x1x256xf32> to vector<1x256xf32>
    %23 = vector.broadcast %22 : vector<1x256xf32> to vector<8x256xf32>
    %24 = arith.mulf %20, %23 : vector<8x256xf32>
    %25 = arith.addf %18, %24 : vector<8x256xf32>
    %26 = vector.extract_strided_slice %3 {offsets = [24, 0], sizes = [8, 256], strides = [1, 1]} : vector<128x256xf32> to vector<8x256xf32>
    %c14_i32 = arith.constant 14 : i32
    %27 = tpu.dynamic_rotate %26 by %c14_i32 dim 1 : vector<8x256xf32>, i32 -> vector<8x256xf32>
    %c3 = arith.constant 3 : index
    %c0_12 = arith.constant 0 : index
    %c0_13 = arith.constant 0 : index
    %28 = vector.load %arg3[%c3, %c0_12, %c0_13] : memref<16x1x256xf32, #tpu.memory_space<vmem>>, vector<1x1x256xf32>
    %29 = vector.shape_cast %28 : vector<1x1x256xf32> to vector<1x256xf32>
    %30 = vector.broadcast %29 : vector<1x256xf32> to vector<8x256xf32>
    %31 = arith.mulf %27, %30 : vector<8x256xf32>
    %32 = arith.addf %25, %31 : vector<8x256xf32>
    %33 = vector.extract_strided_slice %3 {offsets = [32, 0], sizes = [8, 256], strides = [1, 1]} : vector<128x256xf32> to vector<8x256xf32>
    %c1_i32 = arith.constant 1 : i32
    %34 = tpu.dynamic_rotate %33 by %c1_i32 dim 1 : vector<8x256xf32>, i32 -> vector<8x256xf32>
    %c4 = arith.constant 4 : index
    %c0_14 = arith.constant 0 : index
    %c0_15 = arith.constant 0 : index
    %35 = vector.load %arg3[%c4, %c0_14, %c0_15] : memref<16x1x256xf32, #tpu.memory_space<vmem>>, vector<1x1x256xf32>
    %36 = vector.shape_cast %35 : vector<1x1x256xf32> to vector<1x256xf32>
    %37 = vector.broadcast %36 : vector<1x256xf32> to vector<8x256xf32>
    %38 = arith.mulf %34, %37 : vector<8x256xf32>
    %39 = arith.addf %32, %38 : vector<8x256xf32>
    %40 = vector.extract_strided_slice %3 {offsets = [40, 0], sizes = [8, 256], strides = [1, 1]} : vector<128x256xf32> to vector<8x256xf32>
    %c5 = arith.constant 5 : index
    %c0_16 = arith.constant 0 : index
    %c0_17 = arith.constant 0 : index
    %41 = vector.load %arg3[%c5, %c0_16, %c0_17] : memref<16x1x256xf32, #tpu.memory_space<vmem>>, vector<1x1x256xf32>
    %42 = vector.shape_cast %41 : vector<1x1x256xf32> to vector<1x256xf32>
    %43 = vector.broadcast %42 : vector<1x256xf32> to vector<8x256xf32>
    %44 = arith.mulf %40, %43 : vector<8x256xf32>
    %45 = arith.addf %39, %44 : vector<8x256xf32>
    %46 = vector.extract_strided_slice %3 {offsets = [48, 0], sizes = [8, 256], strides = [1, 1]} : vector<128x256xf32> to vector<8x256xf32>
    %c255_i32 = arith.constant 255 : i32
    %47 = tpu.dynamic_rotate %46 by %c255_i32 dim 1 : vector<8x256xf32>, i32 -> vector<8x256xf32>
    %c6 = arith.constant 6 : index
    %c0_18 = arith.constant 0 : index
    %c0_19 = arith.constant 0 : index
    %48 = vector.load %arg3[%c6, %c0_18, %c0_19] : memref<16x1x256xf32, #tpu.memory_space<vmem>>, vector<1x1x256xf32>
    %49 = vector.shape_cast %48 : vector<1x1x256xf32> to vector<1x256xf32>
    %50 = vector.broadcast %49 : vector<1x256xf32> to vector<8x256xf32>
    %51 = arith.mulf %47, %50 : vector<8x256xf32>
    %52 = arith.addf %45, %51 : vector<8x256xf32>
    %53 = vector.extract_strided_slice %3 {offsets = [56, 0], sizes = [8, 256], strides = [1, 1]} : vector<128x256xf32> to vector<8x256xf32>
    %c254_i32 = arith.constant 254 : i32
    %54 = tpu.dynamic_rotate %53 by %c254_i32 dim 1 : vector<8x256xf32>, i32 -> vector<8x256xf32>
    %c7 = arith.constant 7 : index
    %c0_20 = arith.constant 0 : index
    %c0_21 = arith.constant 0 : index
    %55 = vector.load %arg3[%c7, %c0_20, %c0_21] : memref<16x1x256xf32, #tpu.memory_space<vmem>>, vector<1x1x256xf32>
    %56 = vector.shape_cast %55 : vector<1x1x256xf32> to vector<1x256xf32>
    %57 = vector.broadcast %56 : vector<1x256xf32> to vector<8x256xf32>
    %58 = arith.mulf %54, %57 : vector<8x256xf32>
    %59 = arith.addf %52, %58 : vector<8x256xf32>
    %60 = vector.extract_strided_slice %3 {offsets = [64, 0], sizes = [8, 256], strides = [1, 1]} : vector<128x256xf32> to vector<8x256xf32>
    %c241_i32 = arith.constant 241 : i32
    %61 = tpu.dynamic_rotate %60 by %c241_i32 dim 1 : vector<8x256xf32>, i32 -> vector<8x256xf32>
    %c8 = arith.constant 8 : index
    %c0_22 = arith.constant 0 : index
    %c0_23 = arith.constant 0 : index
    %62 = vector.load %arg3[%c8, %c0_22, %c0_23] : memref<16x1x256xf32, #tpu.memory_space<vmem>>, vector<1x1x256xf32>
    %63 = vector.shape_cast %62 : vector<1x1x256xf32> to vector<1x256xf32>
    %64 = vector.broadcast %63 : vector<1x256xf32> to vector<8x256xf32>
    %65 = arith.mulf %61, %64 : vector<8x256xf32>
    %66 = arith.addf %59, %65 : vector<8x256xf32>
    %67 = vector.extract_strided_slice %3 {offsets = [72, 0], sizes = [8, 256], strides = [1, 1]} : vector<128x256xf32> to vector<8x256xf32>
    %c240_i32 = arith.constant 240 : i32
    %68 = tpu.dynamic_rotate %67 by %c240_i32 dim 1 : vector<8x256xf32>, i32 -> vector<8x256xf32>
    %c9 = arith.constant 9 : index
    %c0_24 = arith.constant 0 : index
    %c0_25 = arith.constant 0 : index
    %69 = vector.load %arg3[%c9, %c0_24, %c0_25] : memref<16x1x256xf32, #tpu.memory_space<vmem>>, vector<1x1x256xf32>
    %70 = vector.shape_cast %69 : vector<1x1x256xf32> to vector<1x256xf32>
    %71 = vector.broadcast %70 : vector<1x256xf32> to vector<8x256xf32>
    %72 = arith.mulf %68, %71 : vector<8x256xf32>
    %73 = arith.addf %66, %72 : vector<8x256xf32>
    %74 = vector.extract_strided_slice %3 {offsets = [80, 0], sizes = [8, 256], strides = [1, 1]} : vector<128x256xf32> to vector<8x256xf32>
    %c239_i32 = arith.constant 239 : i32
    %75 = tpu.dynamic_rotate %74 by %c239_i32 dim 1 : vector<8x256xf32>, i32 -> vector<8x256xf32>
    %c10 = arith.constant 10 : index
    %c0_26 = arith.constant 0 : index
    %c0_27 = arith.constant 0 : index
    %76 = vector.load %arg3[%c10, %c0_26, %c0_27] : memref<16x1x256xf32, #tpu.memory_space<vmem>>, vector<1x1x256xf32>
    %77 = vector.shape_cast %76 : vector<1x1x256xf32> to vector<1x256xf32>
    %78 = vector.broadcast %77 : vector<1x256xf32> to vector<8x256xf32>
    %79 = arith.mulf %75, %78 : vector<8x256xf32>
    %80 = arith.addf %73, %79 : vector<8x256xf32>
    %81 = vector.extract_strided_slice %3 {offsets = [88, 0], sizes = [8, 256], strides = [1, 1]} : vector<128x256xf32> to vector<8x256xf32>
    %c238_i32 = arith.constant 238 : i32
    %82 = tpu.dynamic_rotate %81 by %c238_i32 dim 1 : vector<8x256xf32>, i32 -> vector<8x256xf32>
    %c11 = arith.constant 11 : index
    %c0_28 = arith.constant 0 : index
    %c0_29 = arith.constant 0 : index
    %83 = vector.load %arg3[%c11, %c0_28, %c0_29] : memref<16x1x256xf32, #tpu.memory_space<vmem>>, vector<1x1x256xf32>
    %84 = vector.shape_cast %83 : vector<1x1x256xf32> to vector<1x256xf32>
    %85 = vector.broadcast %84 : vector<1x256xf32> to vector<8x256xf32>
    %86 = arith.mulf %82, %85 : vector<8x256xf32>
    %87 = arith.addf %80, %86 : vector<8x256xf32>
    %88 = vector.extract_strided_slice %3 {offsets = [96, 0], sizes = [8, 256], strides = [1, 1]} : vector<128x256xf32> to vector<8x256xf32>
    %c225_i32 = arith.constant 225 : i32
    %89 = tpu.dynamic_rotate %88 by %c225_i32 dim 1 : vector<8x256xf32>, i32 -> vector<8x256xf32>
    %c12 = arith.constant 12 : index
    %c0_30 = arith.constant 0 : index
    %c0_31 = arith.constant 0 : index
    %90 = vector.load %arg3[%c12, %c0_30, %c0_31] : memref<16x1x256xf32, #tpu.memory_space<vmem>>, vector<1x1x256xf32>
    %91 = vector.shape_cast %90 : vector<1x1x256xf32> to vector<1x256xf32>
    %92 = vector.broadcast %91 : vector<1x256xf32> to vector<8x256xf32>
    %93 = arith.mulf %89, %92 : vector<8x256xf32>
    %94 = arith.addf %87, %93 : vector<8x256xf32>
    %95 = vector.extract_strided_slice %3 {offsets = [104, 0], sizes = [8, 256], strides = [1, 1]} : vector<128x256xf32> to vector<8x256xf32>
    %c224_i32 = arith.constant 224 : i32
    %96 = tpu.dynamic_rotate %95 by %c224_i32 dim 1 : vector<8x256xf32>, i32 -> vector<8x256xf32>
    %c13 = arith.constant 13 : index
    %c0_32 = arith.constant 0 : index
    %c0_33 = arith.constant 0 : index
    %97 = vector.load %arg3[%c13, %c0_32, %c0_33] : memref<16x1x256xf32, #tpu.memory_space<vmem>>, vector<1x1x256xf32>
    %98 = vector.shape_cast %97 : vector<1x1x256xf32> to vector<1x256xf32>
    %99 = vector.broadcast %98 : vector<1x256xf32> to vector<8x256xf32>
    %100 = arith.mulf %96, %99 : vector<8x256xf32>
    %101 = arith.addf %94, %100 : vector<8x256xf32>
    %102 = vector.extract_strided_slice %3 {offsets = [112, 0], sizes = [8, 256], strides = [1, 1]} : vector<128x256xf32> to vector<8x256xf32>
    %c223_i32 = arith.constant 223 : i32
    %103 = tpu.dynamic_rotate %102 by %c223_i32 dim 1 : vector<8x256xf32>, i32 -> vector<8x256xf32>
    %c14 = arith.constant 14 : index
    %c0_34 = arith.constant 0 : index
    %c0_35 = arith.constant 0 : index
    %104 = vector.load %arg3[%c14, %c0_34, %c0_35] : memref<16x1x256xf32, #tpu.memory_space<vmem>>, vector<1x1x256xf32>
    %105 = vector.shape_cast %104 : vector<1x1x256xf32> to vector<1x256xf32>
    %106 = vector.broadcast %105 : vector<1x256xf32> to vector<8x256xf32>
    %107 = arith.mulf %103, %106 : vector<8x256xf32>
    %108 = arith.addf %101, %107 : vector<8x256xf32>
    %109 = vector.extract_strided_slice %3 {offsets = [120, 0], sizes = [8, 256], strides = [1, 1]} : vector<128x256xf32> to vector<8x256xf32>
    %c222_i32 = arith.constant 222 : i32
    %110 = tpu.dynamic_rotate %109 by %c222_i32 dim 1 : vector<8x256xf32>, i32 -> vector<8x256xf32>
    %c15 = arith.constant 15 : index
    %c0_36 = arith.constant 0 : index
    %c0_37 = arith.constant 0 : index
    %111 = vector.load %arg3[%c15, %c0_36, %c0_37] : memref<16x1x256xf32, #tpu.memory_space<vmem>>, vector<1x1x256xf32>
    %112 = vector.shape_cast %111 : vector<1x1x256xf32> to vector<1x256xf32>
    %113 = vector.broadcast %112 : vector<1x256xf32> to vector<8x256xf32>
    %114 = arith.mulf %110, %113 : vector<8x256xf32>
    %115 = arith.addf %108, %114 : vector<8x256xf32>
    %c0_38 = arith.constant 0 : index
    %c0_39 = arith.constant 0 : index
    %116 = vector.load %arg4[%c0_38, %c0_39] : memref<8x1xf32, #tpu.memory_space<vmem>>, vector<8x1xf32>
    %117 = vector.broadcast %116 : vector<8x1xf32> to vector<8x256xf32>
    %118 = arith.addf %115, %117 : vector<8x256xf32>
    %cst_40 = arith.constant 0.000000e+00 : f32
    %119 = vector.broadcast %cst_40 : f32 to vector<8x256xf32>
    %120 = arith.maximumf %118, %119 : vector<8x256xf32>
    %c0_41 = arith.constant 0 : index
    %c0_42 = arith.constant 0 : index
    %c0_43 = arith.constant 0 : index
    %121 = vector.load %arg5[%c0_41, %c0_42, %c0_43] : memref<1x8x256xf32, #tpu.memory_space<vmem>>, vector<1x8x256xf32>
    %122 = vector.shape_cast %121 : vector<1x8x256xf32> to vector<8x256xf32>
    %123 = vector.shape_cast %120 : vector<8x256xf32> to vector<1x8x256xf32>
    tpu.vector_store %arg5[%c0_41, %c0_42, %c0_43], %123 {strides = array<i32>} : memref<1x8x256xf32, #tpu.memory_space<vmem>>, vector<1x8x256xf32>,
    return
  }
  func.func @transform_0(%arg0: i32) -> (i32, i32, i32) {
    %c0_i32 = arith.constant 0 : i32
    %c0_i32_0 = arith.constant 0 : i32
    %c0_i32_1 = arith.constant 0 : i32
    return %arg0, %c0_i32, %c0_i32_0 : i32, i32, i32
  }
  func.func @transform_1(%arg0: i32) -> (i32, i32) {
    %c0_i32 = arith.constant 0 : i32
    %c0_i32_0 = arith.constant 0 : i32
    %c0_i32_1 = arith.constant 0 : i32
    return %c0_i32, %c0_i32_0 : i32, i32
  }
  func.func @transform_2(%arg0: i32) -> (i32, i32, i32) {
    %c0_i32 = arith.constant 0 : i32
    %c0_i32_0 = arith.constant 0 : i32
    %c0_i32_1 = arith.constant 0 : i32
    %c0_i32_2 = arith.constant 0 : i32
    return %c0_i32, %c0_i32_0, %c0_i32_1 : i32, i32, i32
  }
  func.func @transform_3(%arg0: i32) -> (i32, i32) {
    %c0_i32 = arith.constant 0 : i32
    %c0_i32_0 = arith.constant 0 : i32
    %c0_i32_1 = arith.constant 0 : i32
    return %c0_i32, %c0_i32_0 : i32, i32
  }
  func.func @transform_4(%arg0: i32) -> (i32, i32, i32) {
    %c0_i32 = arith.constant 0 : i32
    %c0_i32_0 = arith.constant 0 : i32
    %c0_i32_1 = arith.constant 0 : i32
    return %arg0, %c0_i32, %c0_i32_0 : i32, i32, i32
  }
}

</mosaic_0001>

<bundles_post_ra>
// kernel: tpu_custom_call.1
= control target key start
LH: loop header
LB: loop body
LE: loop exit
PB: predicated region body
PF: predicated region fallthrough
CT: control target
= control target key end

     0   :  { %9 = vsyncpa [#allocation3], 0  ;;  %s1442_s0 = inlined_call_operand.vmem [shape: f32[2,4,256], index: 0, kind: input, shape index: {}]   ;;  %s1443_s1 = inlined_call_operand.vmem [shape: f32[128,4], index: 1, kind: input, shape index: {}]   ;;  %s1444_s2 = inlined_call_operand.vmem [shape: f32[16,1,256], index: 2, kind: input, shape index: {}]   ;;  %s1445_s3 = inlined_call_operand.vmem [shape: f32[8,1], index: 3, kind: input, shape index: {}]   ;;  %s1446_s4 = inlined_call_operand.hbm [shape: f32[2,8,256], index: 4, kind: output, shape index: {}]  }
   0x1   :  { %11 = vsyncpa [#allocation3 + $0x1], 0  ;;  %s1108_s15 = smov 0   ;;  %s1110_s16 = smov 0  }
   0x2   :  { %s1112_s17 = smov 0   ;;  %s1114_s18 = smov 0  }
   0x3 LB: > { %s1129_s19 = sadd.s32 4294967295, %s1063_s18   ;;  %s894_s20 = sadd.s32 4294967294, %s1063_s18   ;;  %s1063_s18 = sphi %s1114_s18, %s1452_s18   ;;  %s1059_s17 = sphi %s1112_s17, %s1451_s17   ;;  %s1055_s16 = sphi %s1110_s16, %s1450_s16   ;;  %s1051_s15 = sphi %s1108_s15, %s1449_s15  }
   0x4   : > { %s1133_s21 = sadd.s32 1, %s1063_s18   ;;  %s113_s22 = sadd.s32 1, %s1059_s17 }
   0x5   : > { %s110_s23 = ssub.s32 %s1063_s18, %s1133_s21  ;;  %p123_p0 = scmp.ne.s32.totalorder %s1059_s17, %s1055_s16 }
   0x6   : > { %p111_p1 = scmp.eq.s32.totalorder %s110_s23, 0  ;;  %p124_p2 = scmp.eq.s32.totalorder %s1129_s19, 1 }
   0x7   : > { %p129_p3 = scmp.ne.s32.totalorder %s1055_s16, %s1051_s15  ;;  %p130_p4 = scmp.eq.s32.totalorder %s894_s20, 1 }
   0x8   : > { %s1144_s24 = scalar_select %p111_p1, %s1059_s17, %s113_s22  }
   0x9   : > { %p1146_p5 = por %p124_p2, %p123_p0  ;;  %p1150_p6 = por %p130_p4, %p129_p3 }
   0xa   : > { %p897_p7 = scmp.ge.s32.totalorder %s1063_s18, 1  ;;  %p165_p8 = scmp.lt.s32.totalorder %s1063_s18, 3 }
   0xc   : > { %p166_p9 = pnand %p897_p7, %p165_p8 }
   0xd   : > { %p191_p10 = scmp.lt.s32.totalorder (!%p166_p9), %s1129_s19, 1  ;;  %v1065_v0 = vmov (!%p166_p9), 0.0   ;;  %vm264_vm0 = vcmask (!%p166_p9), 1043456   ;;  %v196_v3 = vld [vmem:[%s1443_s1] sm:$0xff] (!%p166_p9)  ;;  %vm215_vm1 = vcmask (!%p166_p9), 31744   ;;  %v197_v5 = vld [vmem:[%s1443_s1 + $0x8] sm:$0xff] (!%p166_p9)  ;;  %v434_v61 = vlaneseq (!%p166_p9) }
   0xe   : > { %169 = sbr.rel (%p166_p9) target bundleno = 444 (0x1bc), region = 36  ;;  %333 = vmatprep.mubr.f32.mxu0 (!%p166_p9), %v1065_v0  ;;  %381 = vmatprep.mubr.f32.mxu1 (!%p166_p9), %v1065_v0  ;;  %v204_v4 = vld [vmem:[%s1443_s1 + $0x40] sm:$0xff] (!%p166_p9)  ;;  %v205_v6 = vld [vmem:[%s1443_s1 + $0x48] sm:$0xff] (!%p166_p9)  ;;  %v198_v7 = vld [vmem:[%s1443_s1 + $0x10] sm:$0xff] (!%p166_p9)  ;;  %v1066_v19 = vmov (!%p166_p9), 0   ;;  %s1067_s30 = smov (!%p166_p9), 17  }
   0xf   : > { %v206_v8 = vld [vmem:[%s1443_s1 + $0x50] sm:$0xff] (!%p166_p9)  ;;  %v199_v9 = vld [vmem:[%s1443_s1 + $0x18] sm:$0xff] (!%p166_p9)  ;;  %v200_v11 = vld [vmem:[%s1443_s1 + $0x20] sm:$0xff] (!%p166_p9)  ;;  %999 = vset.pattern.permute.xlu0 (!%p166_p9), %v1066_v19  ;;  %s1069_s6 = smov (!%p166_p9), 16   ;;  %s1070_s7 = smov (!%p166_p9), 112  }
  0x10   : > { %v207_v10 = vld [vmem:[%s1443_s1 + $0x58] sm:$0xff] (!%p166_p9)  ;;  %v208_v12 = vld [vmem:[%s1443_s1 + $0x60] sm:$0xff] (!%p166_p9)  ;;  %v201_v13 = vld [vmem:[%s1443_s1 + $0x28] sm:$0xff] (!%p166_p9)  ;;  %s1071_s8 = smov (!%p166_p9), 15   ;;  %s1072_s9 = smov (!%p166_p9), 111  }
  0x11   : > { %v209_v14 = vld [vmem:[%s1443_s1 + $0x68] sm:$0xff] (!%p166_p9)  ;;  %v202_v15 = vld [vmem:[%s1443_s1 + $0x30] sm:$0xff] (!%p166_p9)  ;;  %v203_v17 = vld [vmem:[%s1443_s1 + $0x38] sm:$0xff] (!%p166_p9)  ;;  %s1073_s10 = smov (!%p166_p9), 14   ;;  %s1074_s11 = smov (!%p166_p9), 110  }
  0x12   : > { %v210_v16 = vld [vmem:[%s1443_s1 + $0x70] sm:$0xff] (!%p166_p9)  ;;  %v211_v18 = vld [vmem:[%s1443_s1 + $0x78] sm:$0xff] (!%p166_p9)  ;;  %s1075_s12 = smov (!%p166_p9), 1   ;;  %s1076_s13 = smov (!%p166_p9), 127   ;;  %v808_v52 = vld [vmem:[%s1445_s3] sm:$0xff] (!%p166_p9) }
  0x13   : > { %s1077_s14 = smov (!%p166_p9), 126   ;;  %s1078_s20 = smov (!%p166_p9), 97  }
  0x14   : > { %s1079_s22 = smov (!%p166_p9), 96   ;;  %s1080_s23 = smov (!%p166_p9), 95  }
  0x15   : > { %s192_s27 = scalar_select %p191_p10, %s1129_s19, 1 }
  0x16   : > { %s1081_s29 = smov 94  }
  0x17   : > { %s939_s28 = sshll.u32 %s192_s27, 3 }
  0x18   : > { %s195_s5 = scalar_lea.vmem %s1442_s0, %s939_s28  ;;  %s188_s28 = sand.u32 1, %s1055_s16  }
  0x19   : > { %v212_v1 = vld [vmem:[%s195_s5] sm:$0xff]  ;;  %s1068_s5 = smov 113  }
  0x1a   : > { %v214_v2 = vcombine.high %v212_v1, %v212_v1 }
  0x1c   : > { %901 = vmatprep.subr.msk.mxu0 %vm264_vm0, %v214_v2  ;;  %941 = vmatprep.subr.msk.mxu1 %vm264_vm0, %v214_v2  ;;  %v1242_v2 = vand.u32 127, %v434_v61 }
  0x1d   : > { %902 = vmatpush1.msk.msra.mxu0 %vm264_vm0, %v212_v1  ;;  %942 = vmatpush1.msk.msra.mxu1 %vm264_vm0, %v212_v1 }
  0x1e   : > { %903 = vmatmul.mubr.msk.f32.vlgmr.msra.gmra.mrb[0].mxu0 %vm215_vm1, %v196_v3  ;;  %911 = vmatmul.mubr.msk.f32.vlgmr.msra.gmra.mrb[0].mxu1 %vm215_vm1, %v204_v4  ;;  %v439_v3 = vld [vmem:[%s1444_s2] sm:$0x3]  ;;  %vm436_vm2 = vcmp.lt.s32.totalorder %v1242_v2, 17  ;;  %vm459_vm3 = vcmp.lt.s32.totalorder %v1242_v2, 16  ;;  %vm483_vm4 = vcmp.lt.s32.totalorder %v1242_v2, 15  ;;  %vm507_vm5 = vcmp.lt.s32.totalorder %v1242_v2, 14 }
  0x1f   : > { %339 = vmatprep.mubr.f32.mxu0 %v1065_v0  ;;  %387 = vmatprep.mubr.f32.mxu1 %v1065_v0  ;;  %vm531_vm6 = vcmp.lt.s32.totalorder %v1242_v2, 1  ;;  %vm572_vm7 = vcmp.lt.s32.totalorder %v1242_v2, 127  ;;  %vm620_vm8 = vcmp.lt.s32.totalorder %v1242_v2, 113  ;;  %vm644_vm9 = vcmp.lt.s32.totalorder %v1242_v2, 112 }
  0x20   : > { %vm596_vm10 = vcmp.lt.s32.totalorder %v1242_v2, 126  ;;  %vm668_vm11 = vcmp.lt.s32.totalorder %v1242_v2, 111  ;;  %vm692_vm12 = vcmp.lt.s32.totalorder %v1242_v2, 110  ;;  %vm716_vm13 = vcmp.lt.s32.totalorder %v1242_v2, 97 }
  0x21   : > { %vm740_vm14 = vcmp.lt.s32.totalorder %v1242_v2, 96  ;;  %vm764_vm15 = vcmp.lt.s32.totalorder %v1242_v2, 95  ;;  %vm788_vm0 = vcmp.lt.s32.totalorder %v1242_v2, 94 }
  0x22   : > { %904 = vmatmul.mubr.msk.f32.gmra.mrb[2].mxu0 %vm215_vm1, %v197_v5  ;;  %912 = vmatmul.mubr.msk.f32.gmra.mrb[2].mxu1 %vm215_vm1, %v205_v6  ;;  %v919_v6 = vld [vmem:[%s1444_s2 + $0x2] sm:$0x3] }
  0x23   : > { %345 = vmatprep.mubr.f32.mxu0 %v1065_v0  ;;  %393 = vmatprep.mubr.f32.mxu1 %v1065_v0 }
  0x26   : > { %905 = vmatmul.mubr.msk.f32.gmra.mrb[4].mxu0 %vm215_vm1, %v198_v7  ;;  %913 = vmatmul.mubr.msk.f32.gmra.mrb[4].mxu1 %vm215_vm1, %v206_v8 }
  0x27   : > { %351 = vmatprep.mubr.f32.mxu0 %v1065_v0  ;;  %399 = vmatprep.mubr.f32.mxu1 %v1065_v0 }
  0x2a   : > { %906 = vmatmul.mubr.msk.f32.gmra.mrb[6].mxu0 %vm215_vm1, %v199_v9  ;;  %914 = vmatmul.mubr.msk.f32.gmra.mrb[6].mxu1 %vm215_vm1, %v207_v10  ;;  %v920_v9 = vld [vmem:[%s1444_s2 + $0x4] sm:$0x3] }
  0x2b   : > { %357 = vmatprep.mubr.f32.mxu0 %v1065_v0  ;;  %405 = vmatprep.mubr.f32.mxu1 %v1065_v0 }
  0x2e   : > { %907 = vmatmul.mubr.msk.f32.gmra.mrb[8].mxu0 %vm215_vm1, %v200_v11  ;;  %915 = vmatmul.mubr.msk.f32.gmra.mrb[8].mxu1 %vm215_vm1, %v208_v12 }
  0x2f   : > { %363 = vmatprep.mubr.f32.mxu0 %v1065_v0  ;;  %411 = vmatprep.mubr.f32.mxu1 %v1065_v0 }
  0x32   : > { %908 = vmatmul.mubr.msk.f32.gmra.mrb[10].mxu0 %vm215_vm1, %v201_v13  ;;  %916 = vmatmul.mubr.msk.f32.gmra.mrb[10].mxu1 %vm215_vm1, %v209_v14  ;;  %v921_v14 = vld [vmem:[%s1444_s2 + $0x6] sm:$0x3] }
  0x33   : > { %369 = vmatprep.mubr.f32.mxu0 %v1065_v0  ;;  %417 = vmatprep.mubr.f32.mxu1 %v1065_v0 }
  0x36   : > { %909 = vmatmul.mubr.msk.f32.gmra.mrb[12].mxu0 %vm215_vm1, %v202_v15  ;;  %917 = vmatmul.mubr.msk.f32.gmra.mrb[12].mxu1 %vm215_vm1, %v210_v16 }
  0x37   : > { %375 = vmatprep.mubr.f32.mxu0 %v1065_v0  ;;  %423 = vmatprep.mubr.f32.mxu1 %v1065_v0  ;;  %v442_v0 = vshrl.u32 %v434_v61, 7 }
  0x39   : > { %v1249_v5 = vsub.s32 0, %v442_v0  ;;  %v1254_v7 = vsub.s32 1, %v442_v0 }
  0x3a   : > { %910 = vmatmul.mubr.msk.f32.gmra.mrb[14].mxu0 %vm215_vm1, %v203_v17  ;;  %918 = vmatmul.mubr.msk.f32.gmra.mrb[14].mxu1 %vm215_vm1, %v211_v18 }
  0x3b   : > { %v444_v8 = vrot.slane %v439_v3, %v1249_v5  ;;  %v448_v11 = vrot.slane %v439_v3, %v1254_v7  ;;  %v468_v12 = vrot.slane %v919_v6, %v1249_v5  ;;  %v472_v13 = vrot.slane %v919_v6, %v1254_v7 }
  0xf1   : > { %v335_v20 = vpop.f32.mrb[0].mxu0  ;;  %v383_v21 = vpop.f32.mrb[0].mxu1 }
  0xf2   : > { %v385_v22 = vpop.f32.mrb[1].mxu1  ;;  %430 = vrot.lane.b32.xlu0 %v335_v20, %s1067_s30  ;;  %v337_v23 = vpop.f32.mrb[1].mxu0  ;;  %v492_v20 = vrot.slane %v920_v9, %v1249_v5 }
  0xf3   : > { %618 = vrot.lane.b32.xlu1 %v385_v22, %s1068_s5 }
  0xf5   : > { %v341_v24 = vpop.f32.mrb[2].mxu0  ;;  %v389_v25 = vpop.f32.mrb[2].mxu1 }
  0xf6   : > { %616 = vrot.lane.b32.xlu0 %v383_v21, %s1068_s5  ;;  %v343_v26 = vpop.f32.mrb[3].mxu0  ;;  %v391_v27 = vpop.f32.mrb[3].mxu1  ;;  %v496_v21 = vrot.slane %v920_v9, %v1254_v7 }
  0xf7   : > { %455 = vrot.lane.b32.xlu1 %v341_v24, %s1069_s6  ;;  %v516_v24 = vrot.slane %v921_v14, %v1249_v5 }
  0xf9   : > { %v347_v28 = vpop.f32.mrb[4].mxu0  ;;  %v395_v29 = vpop.f32.mrb[4].mxu1 }
  0xfa   : > { %432 = vrot.lane.b32.xlu0 %v337_v23, %s1067_s30  ;;  %v349_v30 = vpop.f32.mrb[5].mxu0  ;;  %v397_v31 = vpop.f32.mrb[5].mxu1  ;;  %s940_s30 = sshll.u32 %s1129_s19, 8 }
  0xfb   : > { %457 = vrot.lane.b32.xlu1 %v343_v26, %s1069_s6 }
  0xfd   : > { %v353_v32 = vpop.f32.mrb[6].mxu0  ;;  %v401_v33 = vpop.f32.mrb[6].mxu1 }
  0xfe   : > { %640 = vrot.lane.b32.xlu0 %v389_v25, %s1070_s7  ;;  %v355_v34 = vpop.f32.mrb[7].mxu0  ;;  %v403_v35 = vpop.f32.mrb[7].mxu1  ;;  %v520_v25 = vrot.slane %v921_v14, %v1254_v7 }
  0xff   : > { %642 = vrot.lane.b32.xlu1 %v391_v27, %s1070_s7  ;;  %v922_v27 = vld [vmem:[%s1444_s2 + $0x8] sm:$0x3] }
 0x101   : > { %v359_v36 = vpop.f32.mrb[8].mxu0  ;;  %v407_v37 = vpop.f32.mrb[8].mxu1 }
 0x102   : > { %479 = vrot.lane.b32.xlu0 %v347_v28, %s1071_s8  ;;  %v361_v38 = vpop.f32.mrb[9].mxu0  ;;  %v409_v39 = vpop.f32.mrb[9].mxu1 }
 0x103   : > { %481 = vrot.lane.b32.xlu1 %v349_v30, %s1071_s8 }
 0x105   : > { %v1225_v40 = vpop.f32.mrb[10].mxu0  ;;  %v413_v41 = vpop.f32.mrb[10].mxu1 }
 0x106   : > { %664 = vrot.lane.b32.xlu0 %v395_v29, %s1072_s9  ;;  %v1227_v42 = vpop.f32.mrb[11].mxu0  ;;  %v415_v43 = vpop.f32.mrb[11].mxu1 }
 0x107   : > { %666 = vrot.lane.b32.xlu1 %v397_v31, %s1072_s9  ;;  %s1400_s9 = scalar_lea.hbm %s1446_s4, %s940_s30 }
 0x109   : > { %v371_v44 = vpop.f32.mrb[12].mxu0  ;;  %v419_v45 = vpop.f32.mrb[12].mxu1 }
 0x10a   : > { %503 = vrot.lane.b32.xlu0 %v353_v32, %s1073_s10  ;;  %v373_v46 = vpop.f32.mrb[13].mxu0  ;;  %v421_v47 = vpop.f32.mrb[13].mxu1 }
 0x10b   : > { %505 = vrot.lane.b32.xlu1 %v355_v34, %s1073_s10  ;;  %s821_s10 = scalar_lea.sflag [#allocation3], %s188_s28 }
 0x10d   : > { %v377_v48 = vpop.f32.mrb[14].mxu0  ;;  %v425_v49 = vpop.f32.mrb[14].mxu1 }
 0x10e   : > { %688 = vrot.lane.b32.xlu0 %v401_v33, %s1074_s11  ;;  %v379_v50 = vpop.f32.mrb[15].mxu0  ;;  %v427_v51 = vpop.f32.mrb[15].mxu1 }
 0x10f   : > { %690 = vrot.lane.b32.xlu1 %v403_v35, %s1074_s11  ;;  %s1082_s11 = smov [#allocation2]  }
 0x112   : > { %527 = vrot.lane.b32.xlu0 %v359_v36, %s1075_s12 }
 0x113   : > { %529 = vrot.lane.b32.xlu1 %v361_v38, %s1075_s12  ;;  %v544_v38 = vrot.slane %v922_v27, %v1254_v7  ;;  %s1005_s12 = sshll.u32 %s1082_s11, 4  ;;  %s1006_s12 = int_to_ptr.vmem [resolvable:$false] %s1005_s12 }
 0x116   : > { %568 = vrot.lane.b32.xlu0 %v371_v44, %s1076_s13 }
 0x117   : > { %570 = vrot.lane.b32.xlu1 %v373_v46, %s1076_s13  ;;  %s1007_s13 = scalar_lea.vmem %s1006_s12, 512 }
 0x11a   : > { %592 = vrot.lane.b32.xlu0 %v377_v48, %s1077_s14 }
 0x11b   : > { %714 = vrot.lane.b32.xlu1 %v409_v39, %s1078_s20 }
 0x11e   : > { %712 = vrot.lane.b32.xlu0 %v407_v37, %s1078_s20  ;;  %v540_v37 = vrot.slane %v922_v27, %v1249_v5 }
 0x11f   : > { %594 = vrot.lane.b32.xlu1 %v379_v50, %s1077_s14 }
 0x122   : > { %736 = vrot.lane.b32.xlu0 %v413_v41, %s1079_s22  ;;  %v923_v41 = vld [vmem:[%s1444_s2 + $0xa] sm:$0x3] }
 0x123   : > { %738 = vrot.lane.b32.xlu1 %v415_v43, %s1079_s22  ;;  %v561_v61 = vrot.slane %v923_v41, %v1254_v7 }
 0x126   : > { %760 = vrot.lane.b32.xlu0 %v419_v45, %s1080_s23 }
 0x127   : > { %762 = vrot.lane.b32.xlu1 %v421_v47, %s1080_s23 }
 0x12a   : > { %811 = vperm.xlu0 %999, %v808_v52  }
 0x12b   : > { %784 = vrot.lane.b32.xlu1 %v425_v49, %s1081_s29 }
 0x12f   : > { %786 = vrot.lane.b32.xlu1 %v427_v51, %s1081_s29  ;;  %s898_s29 = sshll.u32 %s188_s28, 4 }
 0x130   : > { %s190_s5 = scalar_lea.vmem [#allocation2], %s898_s29 }
 0x131   : > { %s835_s6 = sshll.u32 %s190_s5, 4  ;;  %s1402_s6 = int_to_ptr.vmem [resolvable:$true] %s835_s6 }
 0x132   : > { %s1001_s19 = scalar_lea.vmem %s1402_s6, 256  ;;  %p1008_p0 = scmp.lt.s32.totalorder %s1402_s6, %s1006_s12 }
 0x133   : > { %p1002_p11 = scmp.ne.s32.totalorder %s1402_s6, %s1001_s19  ;;  %p1009_p1 = scmp.lt.s32.totalorder %s1007_s13, %s1001_s19 }
 0x135   : > { %p1003_p12 = pnand %p1002_p11, %p1146_p5  ;;  %p1010_p2 = por %p1009_p1, %p1008_p0 }
 0x137   : > { %p1004_p13 = pneg %p1003_p12 }
 0x139   : > { %p1011_p3 = pnand %p1010_p2, %p1004_p13 }
 0x164   : > { %v431_v53 = vpop.permute.xlu0 %430 }
 0x165   : > { %v1232_v54 = vpop.permute.xlu1 %618 }
 0x168   : > { %v1234_v55 = vpop.permute.xlu0 %616 }
 0x169   : > { %v456_v56 = vpop.permute.xlu1 %455 }
 0x16c   : > { %v433_v57 = vpop.permute.xlu0 %432 }
 0x16d   : > { %v458_v58 = vpop.permute.xlu1 %457  ;;  %v437_v16 = vsel %vm436_vm2, %v431_v53, %v433_v57  ;;  %v438_v17 = vsel %vm436_vm2, %v433_v57, %v431_v53 }
 0x16e   : > { %v460_v18 = vsel %vm459_vm3, %v456_v56, %v458_v58  ;;  %v461_v19 = vsel %vm459_vm3, %v458_v58, %v456_v56  ;;  %v451_v28 = vmul.f32 %v444_v8, %v438_v17  ;;  %v452_v29 = vmul.f32 %v448_v11, %v437_v16  ;;  %v924_v58 = vld [vmem:[%s1444_s2 + $0xc] sm:$0x3]  ;;  %v925_v11 = vld [vmem:[%s1444_s2 + $0xe] sm:$0x3] }
 0x16f   : > { %v475_v30 = vmul.f32 %v468_v12, %v461_v19  ;;  %v476_v31 = vmul.f32 %v472_v13, %v460_v18  ;;  %v557_v56 = vrot.slane %v923_v41, %v1249_v5  ;;  %v581_v9 = vrot.slane %v924_v58, %v1249_v5  ;;  %v927_v19 = vld [vmem:[%s1444_s2 + $0x12] sm:$0x3] }
 0x170   : > { %v1236_v59 = vpop.permute.xlu0 %640  ;;  %v565_v17 = vmul.f32 %v561_v61, %v1227_v42  ;;  %v609_v42 = vrot.slane %v925_v11, %v1254_v7  ;;  %v653_v27 = vrot.slane %v927_v19, %v1249_v5 }
 0x171   : > { %v1238_v60 = vpop.permute.xlu1 %642  ;;  %v477_v43 = vadd.f32 %v475_v30, %v451_v28  ;;  %v478_v44 = vadd.f32 %v476_v31, %v452_v29  ;;  %v564_v16 = vmul.f32 %v557_v56, %v1225_v40  ;;  %v605_v40 = vrot.slane %v925_v11, %v1249_v5 }
 0x172   : > { %v657_v28 = vrot.slane %v927_v19, %v1254_v7  ;;  %v621_v31 = vsel %vm620_vm8, %v1234_v55, %v1232_v54 }
 0x174   : > { %v480_v62 = vpop.permute.xlu0 %479 }
 0x175   : > { %v482_v63 = vpop.permute.xlu1 %481 }
 0x176   : > { %v484_v22 = vsel %vm483_vm4, %v480_v62, %v482_v63  ;;  %v485_v23 = vsel %vm483_vm4, %v482_v63, %v480_v62  ;;  %v926_v62 = vld [vmem:[%s1444_s2 + $0x10] sm:$0x3] }
 0x177   : > { %v499_v35 = vmul.f32 %v492_v20, %v485_v23  ;;  %v500_v36 = vmul.f32 %v496_v21, %v484_v22  ;;  %v629_v12 = vrot.slane %v926_v62, %v1249_v5  ;;  %v633_v18 = vrot.slane %v926_v62, %v1254_v7  ;;  %v928_v20 = vld [vmem:[%s1444_s2 + $0x14] sm:$0x3] }
 0x178   : > { %v1240_v1 = vpop.permute.xlu0 %664  ;;  %v677_v29 = vrot.slane %v928_v20, %v1249_v5 }
 0x179   : > { %v1247_v4 = vpop.permute.xlu1 %666  ;;  %v501_v50 = vadd.f32 %v499_v35, %v477_v43  ;;  %v502_v51 = vadd.f32 %v500_v36, %v478_v44  ;;  %v929_v35 = vld [vmem:[%s1444_s2 + $0x16] sm:$0x3]  ;;  %v930_v36 = vld [vmem:[%s1444_s2 + $0x18] sm:$0x3] }
 0x17c   : > { %v504_v10 = vpop.permute.xlu0 %503 }
 0x17d   : > { %v506_v15 = vpop.permute.xlu1 %505 }
 0x17e   : > { %v508_v33 = vsel %vm507_vm5, %v504_v10, %v506_v15  ;;  %v509_v34 = vsel %vm507_vm5, %v506_v15, %v504_v10  ;;  %v585_v10 = vrot.slane %v924_v58, %v1254_v7  ;;  %v670_v58 = vsel %vm668_vm11, %v1247_v4, %v1240_v1 }
 0x17f   : > { %v523_v45 = vmul.f32 %v516_v24, %v509_v34  ;;  %v524_v46 = vmul.f32 %v520_v25, %v508_v33  ;;  %v622_v33 = vsel %vm620_vm8, %v1232_v54, %v1234_v55  ;;  %v681_v34 = vrot.slane %v928_v20, %v1254_v7 }
 0x180   : > { %v1274_v26 = vpop.permute.xlu0 %688  ;;  %v646_v54 = vsel %vm644_vm9, %v1238_v60, %v1236_v59 }
 0x181   : > { %v1279_v32 = vpop.permute.xlu1 %690  ;;  %v525_v63 = vadd.f32 %v523_v45, %v501_v50  ;;  %v526_v0 = vadd.f32 %v524_v46, %v502_v51  ;;  %v701_v46 = vrot.slane %v929_v35, %v1249_v5  ;;  %v931_v51 = vld [vmem:[%s1444_s2 + $0x1a] sm:$0x3]  ;;  %v661_v56 = vmul.f32 %v657_v28, %v646_v54 }
 0x182   : > { %v693_v62 = vsel %vm692_vm12, %v1274_v26, %v1279_v32 }
 0x184   : > { %v528_v39 = vpop.permute.xlu0 %527 }
 0x185   : > { %v530_v47 = vpop.permute.xlu1 %529 }
 0x186   : > { %v532_v48 = vsel %vm531_vm6, %v528_v39, %v530_v47  ;;  %v533_v49 = vsel %vm531_vm6, %v530_v47, %v528_v39  ;;  %v705_v47 = vrot.slane %v929_v35, %v1254_v7 }
 0x187   : > { %v547_v52 = vmul.f32 %v540_v37, %v533_v49  ;;  %v548_v53 = vmul.f32 %v544_v38, %v532_v48  ;;  %v645_v38 = vsel %vm644_vm9, %v1236_v59, %v1238_v60  ;;  %v725_v48 = vrot.slane %v930_v36, %v1249_v5 }
 0x188   : > { %v569_v57 = vpop.permute.xlu0 %568  ;;  %v636_v49 = vmul.f32 %v629_v12, %v621_v31  ;;  %v637_v59 = vmul.f32 %v633_v18, %v622_v33  ;;  %v932_v12 = vld [vmem:[%s1444_s2 + $0x1c] sm:$0x3] }
 0x189   : > { %v571_v3 = vpop.permute.xlu1 %570  ;;  %v549_v6 = vadd.f32 %v547_v52, %v525_v63  ;;  %v550_v8 = vadd.f32 %v548_v53, %v526_v0  ;;  %v660_v53 = vmul.f32 %v653_v27, %v645_v38  ;;  %v694_v63 = vsel %vm692_vm12, %v1279_v32, %v1274_v26 }
 0x18a   : > { %v573_v13 = vsel %vm572_vm7, %v569_v57, %v571_v3  ;;  %v574_v14 = vsel %vm572_vm7, %v571_v3, %v569_v57  ;;  %v669_v57 = vsel %vm668_vm11, %v1240_v1, %v1247_v4  ;;  %v753_v1 = vrot.slane %v931_v51, %v1254_v7 }
 0x18b   : > { %v566_v22 = vadd.f32 %v564_v16, %v549_v6  ;;  %v567_v23 = vadd.f32 %v565_v17, %v550_v8  ;;  %v588_v24 = vmul.f32 %v581_v9, %v573_v13  ;;  %v589_v25 = vmul.f32 %v585_v10, %v574_v14 }
 0x18c   : > { %v593_v15 = vpop.permute.xlu0 %592  ;;  %v729_v6 = vrot.slane %v930_v36, %v1254_v7  ;;  %v749_v8 = vrot.slane %v931_v51, %v1249_v5  ;;  %v684_v4 = vmul.f32 %v677_v29, %v669_v57  ;;  %v685_v9 = vmul.f32 %v681_v34, %v670_v58 }
 0x18d   : > { %v715_v21 = vpop.permute.xlu1 %714  ;;  %v590_v41 = vadd.f32 %v588_v24, %v566_v22  ;;  %v591_v43 = vadd.f32 %v589_v25, %v567_v23  ;;  %v708_v26 = vmul.f32 %v701_v46, %v693_v62  ;;  %v709_v32 = vmul.f32 %v705_v47, %v694_v63 }
 0x18e   : > { %v777_v29 = vrot.slane %v932_v12, %v1254_v7 }
 0x190   : > { %v713_v30 = vpop.permute.xlu0 %712 }
 0x191   : > { %v595_v37 = vpop.permute.xlu1 %594  ;;  %v717_v14 = vsel %vm716_vm13, %v713_v30, %v715_v21 }
 0x192   : > { %v597_v55 = vsel %vm596_vm10, %v593_v15, %v595_v37  ;;  %v598_v39 = vsel %vm596_vm10, %v595_v37, %v593_v15  ;;  %v718_v15 = vsel %vm716_vm13, %v715_v21, %v713_v30  ;;  %v933_v21 = vld [vmem:[%s1444_s2 + $0x1e] sm:$0x3] }
 0x193   : > { %v612_v44 = vmul.f32 %v605_v40, %v597_v55  ;;  %v613_v45 = vmul.f32 %v609_v42, %v598_v39  ;;  %v773_v40 = vrot.slane %v932_v12, %v1249_v5  ;;  %v732_v42 = vmul.f32 %v725_v48, %v717_v14 }
 0x194   : > { %v737_v61 = vpop.permute.xlu0 %736  ;;  %v733_v22 = vmul.f32 %v729_v6, %v718_v15  ;;  %v797_v35 = vrot.slane %v933_v21, %v1249_v5  ;;  %v801_v36 = vrot.slane %v933_v21, %v1254_v7 }
 0x195   : > { %v614_v60 = vadd.f32 %v612_v44, %v590_v41  ;;  %v615_v50 = vadd.f32 %v613_v45, %v591_v43  ;;  %v739_v52 = vpop.permute.xlu1 %738 }
 0x196   : > { %v741_v18 = vsel %vm740_vm14, %v737_v61, %v739_v52  ;;  %v742_v19 = vsel %vm740_vm14, %v739_v52, %v737_v61 }
 0x197   : > { %v638_v0 = vadd.f32 %v636_v49, %v614_v60  ;;  %v639_v3 = vadd.f32 %v637_v59, %v615_v50  ;;  %v756_v27 = vmul.f32 %v749_v8, %v741_v18  ;;  %v757_v28 = vmul.f32 %v753_v1, %v742_v19 }
 0x198   : > { %v761_v20 = vpop.permute.xlu0 %760 }
 0x199   : > { %v662_v10 = vadd.f32 %v660_v53, %v638_v0  ;;  %v663_v11 = vadd.f32 %v661_v56, %v639_v3  ;;  %v763_v13 = vpop.permute.xlu1 %762 }
 0x19a   : > { %v765_v33 = vsel %vm764_vm15, %v761_v20, %v763_v13  ;;  %v766_v34 = vsel %vm764_vm15, %v763_v13, %v761_v20 }
 0x19b   : > { %v686_v16 = vadd.f32 %v684_v4, %v662_v10  ;;  %v687_v17 = vadd.f32 %v685_v9, %v663_v11  ;;  %v780_v55 = vmul.f32 %v773_v40, %v765_v33  ;;  %v781_v39 = vmul.f32 %v777_v29, %v766_v34 }
 0x19d   : > { %v710_v23 = vadd.f32 %v708_v26, %v686_v16  ;;  %v711_v24 = vadd.f32 %v709_v32, %v687_v17  ;;  %v785_v25 = vpop.permute.xlu1 %784 }
 0x19f   : > { %v734_v30 = vadd.f32 %v732_v42, %v710_v23  ;;  %v735_v31 = vadd.f32 %v733_v22, %v711_v24 }
 0x1a1   : > { %v758_v37 = vadd.f32 %v756_v27, %v734_v30  ;;  %v759_v38 = vadd.f32 %v757_v28, %v735_v31  ;;  %v787_v54 = vpop.permute.xlu1 %786 }
 0x1a2   : > { %v789_v41 = vsel %vm788_vm0, %v785_v25, %v787_v54  ;;  %v790_v43 = vsel %vm788_vm0, %v787_v54, %v785_v25 }
 0x1a3   : > { %v804_v44 = vmul.f32 %v797_v35, %v789_v41  ;;  %v805_v2 = vmul.f32 %v801_v36, %v790_v43  ;;  %v782_v45 = vadd.f32 %v780_v55, %v758_v37  ;;  %v783_v46 = vadd.f32 %v781_v39, %v759_v38 }
 0x1a5   : > { %v806_v47 = vadd.f32 %v804_v44, %v782_v45  ;;  %v807_v48 = vadd.f32 %v805_v2, %v783_v46 }
 0x1a9   : > { %v812_v5 = vpop.permute.xlu0 %811 }
 0x1aa   : > { %v814_v7 = vadd.f32 %v812_v5, %v806_v47  ;;  %v815_v49 = vadd.f32 %v812_v5, %v807_v48 }
 0x1ac   : > { %v816_v59 = vmax.f32 %v814_v7, 0.0  ;;  %v817_v60 = vmax.f32 %v815_v49, 0.0 }
 0x1ae   : > { %818 = vst [vmem:[%s190_s5] sm:$0xff] %v816_v59  ;;  %819 = vst [vmem:[%s190_s5 + $0x8] sm:$0xff] %v817_v60 }
 0x1af   : > { %1014 = shalt.err (!%p1011_p3)
}
 0x1b0   : > { %s1015_s14 = scalar_lea.hbm %s1400_s9, 256  ;;  %s1019_s23 = scalar_lea.hbm %s1446_s4, 512 }
 0x1b1   : > { %p1016_p4 = scmp.ne.s32.totalorder %s1400_s9, %s1015_s14  ;;  %p1020_p9 = scmp.lt.u32.totalorder %s1400_s9, %s1446_s4 }
 0x1b2   : > { %p1021_p10 = scmp.lt.u32.totalorder %s1019_s23, %s1015_s14  ;;  %p1023_p12 = scmp.lt.u32.totalorder %s1015_s14, %s1400_s9 }
 0x1b3   : > { %p1017_p7 = pnand %p1016_p4, %p1146_p5 }
 0x1b4   : > { %p1022_p11 = por %p1021_p10, %p1020_p9 }
 0x1b5   : > { %p1018_p8 = pneg %p1017_p7 }
 0x1b6   : > { %p1024_p13 = por %p1023_p12, %p1022_p11 }
 0x1b8   : > { %p1025_p0 = pnand %p1024_p13, %p1018_p8 }
 0x1ba   : > { %1028 = shalt.err (!%p1025_p0)
}
 0x1bb   : > { %943 = dma.vmem_to_hbm [thread:$0]  (%p1146_p5), %s1402_s6, 256, %s1400_s9, %s821_s10  }
 0x1bc PF: > { %p949_p1 = scmp.ge.s32.totalorder %s1063_s18, 2  ;;  %s847_s29 = sand.u32 1, %s1051_s15  }
 0x1bd   : > { %s848_s30 = scalar_lea.sflag [#allocation3], %s847_s29 }
 0x1be   : > { %p946_p2 = pnand %p949_p1, %p1150_p6 }
 0x1c0   : > { %1046 = dma.done.wait (!%p946_p2), %s848_s30, 256  }
 0x1c1   : > { %1048 = vsyncadd (!%p946_p2), %s848_s30, 4294967040  ;;  %p14_p3 = scmp.ge.s32.totalorder %s1133_s21, 4   ;;  %s1449_s15 = smov %s1055_s16 }
 0x1c2   : > { %s1450_s16 = smov %s1059_s17  ;;  %s1451_s17 = smov %s1144_s24 }
 0x1c3   : > { %s1452_s18 = smov %s1133_s21  ;;  %16 = sbr.rel (!%p14_p3) target bundleno = 3 (0x3), region = 86 }
 0x1ca   :  { %853 = vsyncpa [#allocation3], 1 }
 0x1cb   :  { %855 = vsyncpa [#allocation3 + $0x1], 1 }

</bundles_post_ra>
